<compile_context>
chip_gen: v5e
topology: v5e:2x2
jax: 0.10.0
libtpu: 0.0.40
codegen_flags: <defaults>
</compile_context>

<pallas_src>
import jax
import jax.numpy as jnp
from jax.experimental import pallas as pl
from jax.experimental.pallas import tpu as pltpu


# ----------------------------- kernel factory --------------------------------
def _make_latent_encoder_kernel(x_dim, y_dim, h_dim, z_dim, offs):
    """Build the kernel with static dims / slab offsets baked in."""
    z2 = 2 * z_dim

    def kernel(x_ref, y_ref, slab_ref, eps_ref, out_ref):
        # x_ref:   (BT, N, x_dim)     y_ref: (BT, N, y_dim)
        # slab_ref: packed params (rows_padded, max(H, 2Z))
        # eps_ref: (BT, 1, Z)         out_ref: (BT, 1, 3Z)
        BT, N, _ = x_ref.shape

        # --- static slices into the packed parameter slab (8-row aligned) ---
        w1x = slab_ref[offs["w1x"]:offs["w1x"] + x_dim, :h_dim]   # (x_dim, H)
        w1y = slab_ref[offs["w1y"]:offs["w1y"] + y_dim, :h_dim]   # (y_dim, H)
        b1 = slab_ref[offs["b1"]:offs["b1"] + 1, :h_dim]          # (1, H)
        w2 = slab_ref[offs["w2"]:offs["w2"] + h_dim, :h_dim]      # (H, H)
        b2 = slab_ref[offs["b2"]:offs["b2"] + 1, :h_dim]          # (1, H)
        wh = slab_ref[offs["wh"]:offs["wh"] + h_dim, :z2]         # (H, 2Z)
        bh = slab_ref[offs["bh"]:offs["bh"] + 1, :z2]             # (1, 2Z)

        # --- MLP over all BT*N context rows at once (no per-example loop) ---
        xf = x_ref[...].reshape(BT * N, x_dim)
        yf = y_ref[...].reshape(BT * N, y_dim)

        # equivalent to concat([x, y], -1) @ w1 + b1
        h = (jnp.dot(xf, w1x, preferred_element_type=jnp.float32)
             + jnp.dot(yf, w1y, preferred_element_type=jnp.float32)
             + b1)
        h = jnp.maximum(h, 0.0)                                    # ReLU
        h = jnp.dot(h, w2, preferred_element_type=jnp.float32) + b2

        # --- mean aggregation over the context-point axis ---
        h_agg = jnp.sum(h.reshape(BT, N, h_dim), axis=1) * (1.0 / N)  # (BT, H)

        # --- fused projection heads: [z_mu | z_w] in one matmul ---
        heads = jnp.dot(h_agg, wh, preferred_element_type=jnp.float32) + bh
        z_mu = heads[:, :z_dim]
        z_w = heads[:, z_dim:]

        # reparameterize: z_sigma = 0.1 + 0.9 * sigmoid(z_w); z = mu + sigma*eps
        z_sigma = 0.1 + 0.9 * jax.nn.sigmoid(z_w)
        z = z_mu + z_sigma * eps_ref[:, 0, :]

        # single full-block store: [z | z_mu | z_sigma] along the lane dim
        packed = jnp.concatenate([z, z_mu, z_sigma], axis=-1)      # (BT, 3Z)
        out_ref[...] = packed.reshape(BT, 1, 3 * z_dim)

    return kernel


# ----------------------------- param packing ---------------------------------
def _build_param_slab(params, x_dim, y_dim, h_dim, z_dim):
    """Pack all weights/biases into one f32 slab; segments 8-row aligned."""
    width = max(h_dim, 2 * z_dim)
    pieces = [
        ("w1x", params["w1"][:x_dim]),
        ("w1y", params["w1"][x_dim:]),
        ("b1", params["b1"]),
        ("w2", params["w2"]),
        ("b2", params["b2"]),
        ("wh", jnp.concatenate([params["wmu"], params["ww"]], axis=1)),
        ("bh", jnp.concatenate([params["bmu"], params["bw"]], axis=1)),
    ]
    offs = {}
    rows = []
    cur = 0
    for name, arr in pieces:
        r, c = arr.shape
        rp = ((r + 7) // 8) * 8  # 8-sublane aligned segment start
        offs[name] = cur
        rows.append(jnp.pad(arr.astype(jnp.float32),
                            ((0, rp - r), (0, width - c))))
        cur += rp
    slab = jnp.concatenate(rows, axis=0)
    return slab, offs


# ----------------------------- wrapper ----------------------------------------
def latent_encoder_forward(x_context, y_context, params, eps, *, batch_tile=None):
    """Returns (z, z_mu, z_sigma), each of shape (B, z_dim)."""
    B, N, x_dim = x_context.shape
    y_dim = y_context.shape[-1]
    H = params["w1"].shape[1]
    Z = params["wmu"].shape[1]

    # At most 2 grid blocks: amortizes per-step overhead while still giving
    # v7x's two TensorCores independent parallel work.
    if batch_tile is None:
        batch_tile = max(1, (B + 1) // 2)
    BT = min(batch_tile, B)
    num_blocks = (B + BT - 1) // BT
    Bp = num_blocks * BT
    if Bp != B:  # pad batch to a multiple of the tile; padded rows are dropped
        pad = Bp - B
        x_context = jnp.pad(x_context, ((0, pad), (0, 0), (0, 0)))
        y_context = jnp.pad(y_context, ((0, pad), (0, 0), (0, 0)))
        eps = jnp.pad(eps, ((0, pad), (0, 0)))

    slab, offs = _build_param_slab(params, x_dim, y_dim, H, Z)
    eps3 = eps.reshape(Bp, 1, Z)

    kernel = _make_latent_encoder_kernel(x_dim, y_dim, H, Z, offs)

    out = pl.pallas_call(
        kernel,
        out_shape=jax.ShapeDtypeStruct((Bp, 1, 3 * Z), jnp.float32),
        grid_spec=pltpu.PrefetchScalarGridSpec(
            num_scalar_prefetch=0,
            grid=(num_blocks,),
            in_specs=[
                pl.BlockSpec((BT, N, x_dim), lambda b: (b, 0, 0)),  # x tile
                pl.BlockSpec((BT, N, y_dim), lambda b: (b, 0, 0)),  # y tile
                pl.BlockSpec(slab.shape, lambda b: (0, 0)),         # packed params
                pl.BlockSpec((BT, 1, Z), lambda b: (b, 0, 0)),      # eps tile
            ],
            out_specs=pl.BlockSpec((BT, 1, 3 * Z), lambda b: (b, 0, 0)),
        ),
        compiler_params=pltpu.CompilerParams(
            dimension_semantics=("parallel",),
        ),
    )(x_context, y_context, slab, eps3)

    out = out[:B, 0, :]
    z = out[:, :Z]
    z_mu = out[:, Z:2 * Z]
    z_sigma = out[:, 2 * Z:]
    return z, z_mu, z_sigma


# ----------------------------- reference (plain JAX) -------------------------
def latent_encoder_reference(x_context, y_context, params, eps):
    h = jnp.concatenate([x_context, y_context], axis=-1)
    h = h @ params["w1"] + params["b1"][0]
    h = jnp.maximum(h, 0.0)
    h = h @ params["w2"] + params["b2"][0]
    h = jnp.mean(h, axis=1)                                   # (B, H)
    z_mu = h @ params["wmu"] + params["bmu"][0]
    z_w = h @ params["ww"] + params["bw"][0]
    z_sigma = 0.1 + 0.9 * jax.nn.sigmoid(z_w)
    z = z_mu + z_sigma * eps
    return z, z_mu, z_sigma


# ----------------------------- main -------------------------------------------
if __name__ == "__main__":
    # small shapes consistent with the module
    B, N = 8, 16         # batch, num context points
    x_dim, y_dim = 2, 2
    h_dim, z_dim = 32, 16
    Din = x_dim + y_dim

    key = jax.random.PRNGKey(0)
    keys = jax.random.split(key, 12)

    # deterministic synthetic parameter init (not a checkpoint load)
    params = {
        "w1":  0.1 * jax.random.normal(keys[0], (Din, h_dim), jnp.float32),
        "b1":  0.1 * jax.random.normal(keys[1], (1, h_dim), jnp.float32),
        "w2":  0.1 * jax.random.normal(keys[2], (h_dim, h_dim), jnp.float32),
        "b2":  0.1 * jax.random.normal(keys[3], (1, h_dim), jnp.float32),
        "wmu": 0.1 * jax.random.normal(keys[4], (h_dim, z_dim), jnp.float32),
        "bmu": 0.1 * jax.random.normal(keys[5], (1, z_dim), jnp.float32),
        "ww":  0.1 * jax.random.normal(keys[6], (h_dim, z_dim), jnp.float32),
        "bw":  0.1 * jax.random.normal(keys[7], (1, z_dim), jnp.float32),
        # proj_z_r exists in __init__ but is unused in forward; kept for parity
        "wr":  0.1 * jax.random.normal(keys[8], (h_dim, z_dim), jnp.float32),
        "br":  0.1 * jax.random.normal(keys[9], (1, z_dim), jnp.float32),
    }

    x_context = jax.random.normal(keys[10], (B, N, x_dim), jnp.float32)
    y_context = jax.random.normal(keys[11], (B, N, y_dim), jnp.float32)

    # reparameterization noise (torch.randn_like) made deterministic + explicit
    eps = jax.random.normal(jax.random.PRNGKey(42), (B, z_dim), jnp.float32)

    z, z_mu, z_sigma = latent_encoder_forward(x_context, y_context, params, eps)
    jax.block_until_ready((z, z_mu, z_sigma))

    z_r, zmu_r, zsig_r = latent_encoder_reference(x_context, y_context, params, eps)
    assert jnp.allclose(z, z_r, atol=1e-5), "z mismatch"
    assert jnp.allclose(z_mu, zmu_r, atol=1e-5), "z_mu mismatch"
    assert jnp.allclose(z_sigma, zsig_r, atol=1e-5), "z_sigma mismatch"

    # TODO(synk): is_attentive=True (nn.MultiheadAttention) and
    # diffusion_process branches are config-off here and not implemented.
    print("KERNEL_OK")
</pallas_src>

<mosaic_0001>
module attributes {stable_mosaic.version = 11 : i64} {
  func.func @kernel(%arg0: i32, %arg1: memref<4x16x2xf32, #tpu.memory_space<vmem>>, %arg2: memref<4x16x2xf32, #tpu.memory_space<vmem>>, %arg3: memref<104x32xf32, #tpu.memory_space<vmem>>, %arg4: memref<4x1x16xf32, #tpu.memory_space<vmem>>, %arg5: memref<4x1x48xf32, #tpu.memory_space<vmem>>) attributes {dimension_semantics = [#tpu.dimension_semantics<parallel>], iteration_bounds = array<i64: 2>, scalar_prefetch = 0 : i64, scratch_operands = 0 : i64, tpu.core_type = #tpu.core_type<tc>, window_params = [{transform_indices = @transform_0, window_bounds = array<i64: 4, 16, 2>}, {transform_indices = @transform_1, window_bounds = array<i64: 4, 16, 2>}, {pipeline_mode = #tpu.pipeline_mode<synchronous>, transform_indices = @transform_2, window_bounds = array<i64: 104, 32>}, {transform_indices = @transform_3, window_bounds = array<i64: 4, 1, 16>}, {transform_indices = @transform_4, window_bounds = array<i64: 4, 1, 48>}]} {
    %c0 = arith.constant 0 : index
    %c0_0 = arith.constant 0 : index
    %0 = vector.load %arg3[%c0, %c0_0] : memref<104x32xf32, #tpu.memory_space<vmem>>, vector<2x32xf32>
    %c8 = arith.constant 8 : index
    %c0_1 = arith.constant 0 : index
    %1 = vector.load %arg3[%c8, %c0_1] : memref<104x32xf32, #tpu.memory_space<vmem>>, vector<2x32xf32>
    %c16 = arith.constant 16 : index
    %c0_2 = arith.constant 0 : index
    %2 = vector.load %arg3[%c16, %c0_2] : memref<104x32xf32, #tpu.memory_space<vmem>>, vector<1x32xf32>
    %c24 = arith.constant 24 : index
    %c0_3 = arith.constant 0 : index
    %3 = vector.load %arg3[%c24, %c0_3] : memref<104x32xf32, #tpu.memory_space<vmem>>, vector<32x32xf32>
    %c56 = arith.constant 56 : index
    %c0_4 = arith.constant 0 : index
    %4 = vector.load %arg3[%c56, %c0_4] : memref<104x32xf32, #tpu.memory_space<vmem>>, vector<1x32xf32>
    %c64 = arith.constant 64 : index
    %c0_5 = arith.constant 0 : index
    %5 = vector.load %arg3[%c64, %c0_5] : memref<104x32xf32, #tpu.memory_space<vmem>>, vector<32x32xf32>
    %c96 = arith.constant 96 : index
    %c0_6 = arith.constant 0 : index
    %6 = vector.load %arg3[%c96, %c0_6] : memref<104x32xf32, #tpu.memory_space<vmem>>, vector<1x32xf32>
    %c0_7 = arith.constant 0 : index
    %c0_8 = arith.constant 0 : index
    %c0_9 = arith.constant 0 : index
    %7 = vector.load %arg1[%c0_7, %c0_8, %c0_9] : memref<4x16x2xf32, #tpu.memory_space<vmem>>, vector<4x16x2xf32>
    %8 = vector.shape_cast %7 : vector<4x16x2xf32> to vector<64x2xf32>
    %c0_10 = arith.constant 0 : index
    %c0_11 = arith.constant 0 : index
    %c0_12 = arith.constant 0 : index
    %9 = vector.load %arg2[%c0_10, %c0_11, %c0_12] : memref<4x16x2xf32, #tpu.memory_space<vmem>>, vector<4x16x2xf32>
    %10 = vector.shape_cast %9 : vector<4x16x2xf32> to vector<64x2xf32>
    %cst = arith.constant dense<0.000000e+00> : vector<64x32xf32>
    %11 = tpu.matmul %8, %0, %cst {dimension_numbers = #tpu.dot_dimension_numbers<[1], [0], [0], [1], [0, 0, 1, 1], [], []>} : vector<64x2xf32>, vector<2x32xf32>, vector<64x32xf32> -> vector<64x32xf32>
    %cst_13 = arith.constant dense<0.000000e+00> : vector<64x32xf32>
    %12 = tpu.matmul %10, %1, %cst_13 {dimension_numbers = #tpu.dot_dimension_numbers<[1], [0], [0], [1], [0, 0, 1, 1], [], []>} : vector<64x2xf32>, vector<2x32xf32>, vector<64x32xf32> -> vector<64x32xf32>
    %13 = arith.addf %11, %12 : vector<64x32xf32>
    %14 = vector.broadcast %2 : vector<1x32xf32> to vector<64x32xf32>
    %15 = arith.addf %13, %14 : vector<64x32xf32>
    %cst_14 = arith.constant 0.000000e+00 : f32
    %16 = vector.broadcast %cst_14 : f32 to vector<64x32xf32>
    %17 = arith.maximumf %15, %16 : vector<64x32xf32>
    %cst_15 = arith.constant dense<0.000000e+00> : vector<64x32xf32>
    %18 = tpu.matmul %17, %3, %cst_15 {dimension_numbers = #tpu.dot_dimension_numbers<[1], [0], [0], [1], [0, 0, 1, 1], [], []>} : vector<64x32xf32>, vector<32x32xf32>, vector<64x32xf32> -> vector<64x32xf32>
    %19 = vector.broadcast %4 : vector<1x32xf32> to vector<64x32xf32>
    %20 = arith.addf %18, %19 : vector<64x32xf32>
    %21 = vector.shape_cast %20 : vector<64x32xf32> to vector<4x16x32xf32>
    %cst_16 = arith.constant dense<0.000000e+00> : vector<4x32xf32>
    %22 = vector.multi_reduction <add>, %21, %cst_16 [1] : vector<4x16x32xf32> to vector<4x32xf32>
    %cst_17 = arith.constant 6.250000e-02 : f32
    %23 = vector.broadcast %cst_17 : f32 to vector<4x32xf32>
    %24 = arith.mulf %22, %23 : vector<4x32xf32>
    %cst_18 = arith.constant dense<0.000000e+00> : vector<4x32xf32>
    %25 = tpu.matmul %24, %5, %cst_18 {dimension_numbers = #tpu.dot_dimension_numbers<[1], [0], [0], [1], [0, 0, 1, 1], [], []>} : vector<4x32xf32>, vector<32x32xf32>, vector<4x32xf32> -> vector<4x32xf32>
    %26 = vector.broadcast %6 : vector<1x32xf32> to vector<4x32xf32>
    %27 = arith.addf %25, %26 : vector<4x32xf32>
    %28 = vector.extract_strided_slice %27 {offsets = [0, 0], sizes = [4, 16], strides = [1, 1]} : vector<4x32xf32> to vector<4x16xf32>
    %29 = vector.extract_strided_slice %27 {offsets = [0, 16], sizes = [4, 16], strides = [1, 1]} : vector<4x32xf32> to vector<4x16xf32>
    %30 = arith.negf %29 : vector<4x16xf32>
    %31 = math.exp %30 : vector<4x16xf32>
    %cst_19 = arith.constant 1.000000e+00 : f32
    %32 = vector.broadcast %cst_19 : f32 to vector<4x16xf32>
    %33 = arith.addf %32, %31 : vector<4x16xf32>
    %34 = arith.divf %32, %33 : vector<4x16xf32>
    %cst_20 = arith.constant 0.899999976 : f32
    %35 = vector.broadcast %cst_20 : f32 to vector<4x16xf32>
    %36 = arith.mulf %35, %34 : vector<4x16xf32>
    %cst_21 = arith.constant 1.000000e-01 : f32
    %37 = vector.broadcast %cst_21 : f32 to vector<4x16xf32>
    %38 = arith.addf %37, %36 : vector<4x16xf32>
    %c0_22 = arith.constant 0 : index
    %c0_23 = arith.constant 0 : index
    %c0_24 = arith.constant 0 : index
    %39 = vector.load %arg4[%c0_22, %c0_23, %c0_24] : memref<4x1x16xf32, #tpu.memory_space<vmem>>, vector<4x1x16xf32>
    %40 = vector.shape_cast %39 : vector<4x1x16xf32> to vector<4x16xf32>
    %41 = arith.mulf %38, %40 : vector<4x16xf32>
    %42 = arith.addf %28, %41 : vector<4x16xf32>
    %43 = tpu.concatenate %42, %28, %38 in 1 : vector<4x16xf32>, vector<4x16xf32>, vector<4x16xf32> -> vector<4x48xf32>
    %44 = vector.shape_cast %43 : vector<4x48xf32> to vector<4x1x48xf32>
    %c0_25 = arith.constant 0 : index
    %c0_26 = arith.constant 0 : index
    %c0_27 = arith.constant 0 : index
    %45 = vector.load %arg5[%c0_25, %c0_26, %c0_27] : memref<4x1x48xf32, #tpu.memory_space<vmem>>, vector<4x1x48xf32>
    tpu.vector_store %arg5[%c0_25, %c0_26, %c0_27], %44 {strides = array<i32>} : memref<4x1x48xf32, #tpu.memory_space<vmem>>, vector<4x1x48xf32>,
    return
  }
  func.func @transform_0(%arg0: i32) -> (i32, i32, i32) {
    %c0_i32 = arith.constant 0 : i32
    %c0_i32_0 = arith.constant 0 : i32
    %c0_i32_1 = arith.constant 0 : i32
    return %arg0, %c0_i32, %c0_i32_0 : i32, i32, i32
  }
  func.func @transform_1(%arg0: i32) -> (i32, i32, i32) {
    %c0_i32 = arith.constant 0 : i32
    %c0_i32_0 = arith.constant 0 : i32
    %c0_i32_1 = arith.constant 0 : i32
    return %arg0, %c0_i32, %c0_i32_0 : i32, i32, i32
  }
  func.func @transform_2(%arg0: i32) -> (i32, i32) {
    %c0_i32 = arith.constant 0 : i32
    %c0_i32_0 = arith.constant 0 : i32
    %c0_i32_1 = arith.constant 0 : i32
    return %c0_i32, %c0_i32_0 : i32, i32
  }
  func.func @transform_3(%arg0: i32) -> (i32, i32, i32) {
    %c0_i32 = arith.constant 0 : i32
    %c0_i32_0 = arith.constant 0 : i32
    %c0_i32_1 = arith.constant 0 : i32
    return %arg0, %c0_i32, %c0_i32_0 : i32, i32, i32
  }
  func.func @transform_4(%arg0: i32) -> (i32, i32, i32) {
    %c0_i32 = arith.constant 0 : i32
    %c0_i32_0 = arith.constant 0 : i32
    %c0_i32_1 = arith.constant 0 : i32
    return %arg0, %c0_i32, %c0_i32_0 : i32, i32, i32
  }
}

</mosaic_0001>

<bundles_post_ra>
// kernel: tpu_custom_call.1
= control target key start
LH: loop header
LB: loop body
LE: loop exit
PB: predicated region body
PF: predicated region fallthrough
CT: control target
= control target key end

     0   :  { %9 = vsyncpa [#allocation3], 0  ;;  %s1121_s0 = inlined_call_operand.vmem [shape: f32[8,16,2], index: 0, kind: input, shape index: {}]   ;;  %s1122_s1 = inlined_call_operand.vmem [shape: f32[8,16,2], index: 1, kind: input, shape index: {}]   ;;  %s1123_s2 = inlined_call_operand.vmem [shape: f32[104,32], index: 2, kind: input, shape index: {}]   ;;  %s1124_s3 = inlined_call_operand.vmem [shape: f32[8,1,16], index: 3, kind: input, shape index: {}]   ;;  %s1125_s4 = inlined_call_operand.hbm [shape: f32[8,1,48], index: 4, kind: output, shape index: {}]  }
   0x1   :  { %11 = vsyncpa [#allocation3 + $0x1], 0  ;;  %s930_s15 = smov 0   ;;  %s932_s16 = smov 0  }
   0x2   :  { %s934_s17 = smov 0   ;;  %s936_s18 = smov 0  }
   0x3 LB: > { %s736_s19 = sadd.s32 4294967295, %s900_s18   ;;  %s737_s20 = sadd.s32 4294967294, %s900_s18   ;;  %s900_s18 = sphi %s936_s18, %s1131_s18   ;;  %s896_s17 = sphi %s934_s17, %s1130_s17   ;;  %s892_s16 = sphi %s932_s16, %s1129_s16   ;;  %s888_s15 = sphi %s930_s15, %s1128_s15  }
   0x4   : > { %s953_s21 = sadd.s32 1, %s900_s18   ;;  %s123_s22 = sadd.s32 1, %s896_s17 }
   0x5   : > { %s120_s23 = ssub.s32 %s900_s18, %s953_s21  ;;  %p133_p0 = scmp.ne.s32.totalorder %s896_s17, %s892_s16 }
   0x6   : > { %p121_p1 = scmp.eq.s32.totalorder %s120_s23, 0  ;;  %p134_p2 = scmp.eq.s32.totalorder %s736_s19, 1 }
   0x7   : > { %p139_p3 = scmp.ne.s32.totalorder %s892_s16, %s888_s15  ;;  %p140_p4 = scmp.eq.s32.totalorder %s737_s20, 1 }
   0x8   : > { %s963_s24 = scalar_select %p121_p1, %s896_s17, %s123_s22  }
   0x9   : > { %p965_p5 = por %p134_p2, %p133_p0  ;;  %p969_p6 = por %p140_p4, %p139_p3 }
   0xa   : > { %p740_p7 = scmp.ge.s32.totalorder %s900_s18, 1  ;;  %p189_p8 = scmp.lt.s32.totalorder %s900_s18, 3 }
   0xc   : > { %p190_p9 = pnand %p740_p7, %p189_p8 }
   0xd   : > { %s981_s5 = sshll.u32 (!%p190_p9), %s736_s19, 2  ;;  %s902_s28 = smov (!%p190_p9), 16  }
   0xe   : > { %193 = sbr.rel (%p190_p9) target bundleno = 661 (0x295), region = 36  ;;  %p227_p10 = scmp.lt.s32.totalorder (!%p190_p9), %s981_s5, 7 }
   0xf   : > { %s650_s11 = scalar_lea.hbm (!%p190_p9), %s1125_s4, %s981_s5  ;;  %s858_s27 = scalar_lea.hbm (!%p190_p9), %s1125_s4, 8 }
  0x10   : > { %s1089_s14 = sshll.u32 (!%p190_p9), %s650_s11, 4  ;;  %s654_s14 = int_to_ptr.hbm [resolvable:$true] %s1089_s14 }
  0x11   : > { %s852_s19 = sshra.s32 (!%p190_p9), %s654_s14, 4  ;;  %s853_s19 = int_to_ptr.hbm [resolvable:$true] %s852_s19 }
  0x12   : > { %p859_p0 = scmp.lt.s32.totalorder (!%p190_p9), %s853_s19, %s1125_s4 }
  0x13   : > { %v247_v0 = vld [vmem:[%s1123_s2 + $0x8] sm:$0x3]  ;;  %vm300_vm0 = vcmask 1041408   ;;  %v246_v1 = vld [vmem:[%s1123_s2] sm:$0x3]  ;;  %s228_s6 = scalar_select %p227_p10, %s981_s5, 7 }
  0x14   : > { %749 = vmatpush.msk.msra.mxu0 %vm300_vm0, %v247_v0  ;;  %758 = vmatpush.msk.msra.mxu1 %vm300_vm0, %v246_v1  ;;  %vm275_vm1 = vcmask 15360   ;;  %v252_v22 = vld [vmem:[%s1123_s2 + $0x30] sm:$0xff]  ;;  %v251_v23 = vld [vmem:[%s1123_s2 + $0x28] sm:$0xff]  ;;  %v250_v24 = vld [vmem:[%s1123_s2 + $0x20] sm:$0xff]  ;;  %vm431_vm2 = vcmask 261120   ;;  %vm542_vm3 = vcmask 1041409  }
  0x15   : > { %783 = vmatpush.msk.msra.mxu3 %vm300_vm0, %v247_v0  ;;  %s781_s7 = sshll.u32 %s228_s6, 4  ;;  %s243_s10 = scalar_lea.vmem %s1124_s3, %s228_s6  ;;  %468 = vmatpush.msra.mxu2 %v252_v22  ;;  %v249_v25 = vld [vmem:[%s1123_s2 + $0x18] sm:$0xff]  ;;  %v831_v26 = vld [vmem:[%s1123_s2 + $0x10] ss:$0 sm:$0xff]  ;;  %vm544_vm4 = vcmask 1042434   ;;  %vm546_vm5 = vcmask 1043459  }
  0x16   : > { %s991_s13 = scalar_lea.vmem %s1122_s1, %s781_s7  ;;  %v591_v2 = vld [vmem:[%s243_s10] sm:$0x1]  ;;  %v592_v3 = vld [vmem:[%s243_s10 + $0x1] sm:$0x1]  ;;  %v593_v4 = vld [vmem:[%s243_s10 + $0x2] sm:$0x1]  ;;  %s996_s20 = scalar_lea.vmem %s1121_s0, %s781_s7 }
  0x17   : > { %784 = vmatpush.msk.msrb.mxu3 %vm300_vm0, %v246_v1  ;;  %v267_v5 = vld [vmem:[%s991_s13] sm:$0xff]  ;;  %599 = vst [vmem:[#allocation1] ss:$9 sm:$0xff] %v591_v2  ;;  %v274_v8 = vld [vmem:[%s991_s13 + $0x38] sm:$0xff]  ;;  %v268_v9 = vld [vmem:[%s991_s13 + $0x8] sm:$0xff]  ;;  %469 = vmatpush.msra.mxu2 %v251_v23  ;;  %s903_s6 = smov 112  }
  0x18   : > { %v594_v6 = vld [vmem:[%s243_s10 + $0x3] sm:$0x1]  ;;  %750 = vmatmul.msk.f32.vlgmr.msra.gmra.mxu0 %vm275_vm1, %v267_v5  ;;  %601 = vst [vmem:[#allocation1 + $0x1] ss:$9 sm:$0xff] %v592_v3  ;;  %757 = vmatmul.msk.f32.vlgmr.msra.gmra.mxu3 %vm275_vm1, %v274_v8  ;;  %v260_v10 = vld [vmem:[%s996_s20 + $0x8] sm:$0xff]  ;;  %v266_v11 = vld [vmem:[%s996_s20 + $0x38] sm:$0xff] }
  0x19   : > { %v259_v7 = vld [vmem:[%s996_s20] sm:$0xff]  ;;  %603 = vst [vmem:[#allocation1 + $0x2] ss:$9 sm:$0xff] %v593_v4  ;;  %v269_v12 = vld [vmem:[%s991_s13 + $0x10] sm:$0xff]  ;;  %v270_v14 = vld [vmem:[%s991_s13 + $0x18] sm:$0xff]  ;;  %785 = vmatpush.msra.mxu3 %v252_v22  ;;  %470 = vmatpush.msra.mxu2 %v250_v24  ;;  %s223_s7 = sand.u32 1, %s892_s16  }
  0x1a   : > { %759 = vmatmul.msk.f32.vlgmr.msra.gmra.mxu1 %vm275_vm1, %v259_v7  ;;  %605 = vst [vmem:[#allocation1 + $0x3] ss:$9 sm:$0xff] %v594_v6  ;;  %v261_v13 = vld [vmem:[%s996_s20 + $0x10] sm:$0xff]  ;;  %v262_v15 = vld [vmem:[%s996_s20 + $0x18] sm:$0xff]  ;;  %v271_v16 = vld [vmem:[%s991_s13 + $0x20] sm:$0xff]  ;;  %s741_s8 = sshll.u32 %s223_s7, 2 }
  0x1b   : > { %v263_v17 = vld [vmem:[%s996_s20 + $0x20] sm:$0xff]  ;;  %v272_v18 = vld [vmem:[%s991_s13 + $0x28] sm:$0xff]  ;;  %v273_v20 = vld [vmem:[%s991_s13 + $0x30] sm:$0xff]  ;;  %786 = vmatpush.msra.mxu3 %v251_v23  ;;  %471 = vmatpush.msra.mxu2 %v249_v25  ;;  %vm624_vm10 = vcmask 130048   ;;  %vm634_vm11 = vcmask 385024   ;;  %s225_s12 = scalar_lea.vmem [#allocation2], %s741_s8 }
  0x1c   : > { %v264_v19 = vld [vmem:[%s996_s20 + $0x28] sm:$0xff]  ;;  %v265_v21 = vld [vmem:[%s996_s20 + $0x30] sm:$0xff]  ;;  %v832_v8 = vld [vmem:[%s1123_s2 + $0x38] ss:$0 sm:$0xff]  ;;  %s651_s13 = sshll.u32 %s225_s12, 4  ;;  %s640_s5 = scalar_lea.sflag [#allocation3], %s223_s7  ;;  %s652_s13 = int_to_ptr.vmem [resolvable:$true] %s651_s13 }
  0x1d   : > { %787 = vmatpush.msra.mxu3 %v250_v24  ;;  %v254_v23 = vld [vmem:[%s1123_s2 + $0x40] sm:$0xff]  ;;  %s854_s20 = scalar_lea.hbm %s853_s19, 4 }
  0x1e   : > { %p855_p11 = scmp.ne.s32.totalorder %s853_s19, %s854_s20  ;;  %p860_p1 = scmp.lt.s32.totalorder %s858_s27, %s854_s20 }
  0x1f   : > { %788 = vmatpush.msra.mxu3 %v249_v25 }
  0x20   : > { %751 = vmatmul.msk.f32.gmra.mxu0 %vm275_vm1, %v268_v9  ;;  %766 = vmatmul.msk.f32.vlgmr.msrb.gmra.mxu3 %vm275_vm1, %v266_v11  ;;  %p856_p12 = pnand %p855_p11, %p965_p5  ;;  %p861_p2 = por %p860_p1, %p859_p0 }
  0x22   : > { %760 = vmatmul.msk.f32.gmra.mxu1 %vm275_vm1, %v260_v10  ;;  %p857_p13 = pneg %p856_p12 }
  0x24   : > { %p862_p3 = pnand %p861_p2, %p857_p13 }
  0x28   : > { %752 = vmatmul.msk.f32.gmra.mxu0 %vm275_vm1, %v269_v12  ;;  %v257_v12 = vld [vmem:[%s1123_s2 + $0x58] sm:$0xff] }
  0x29   : > { %562 = vmatpush.msrb.mxu3 %v257_v12 }
  0x2a   : > { %761 = vmatmul.msk.f32.gmra.mxu1 %vm275_vm1, %v261_v13 }
  0x30   : > { %753 = vmatmul.msk.f32.gmra.mxu0 %vm275_vm1, %v270_v14 }
  0x32   : > { %762 = vmatmul.msk.f32.gmra.mxu1 %vm275_vm1, %v262_v15 }
  0x38   : > { %754 = vmatmul.msk.f32.gmra.mxu0 %vm275_vm1, %v271_v16  ;;  %v256_v16 = vld [vmem:[%s1123_s2 + $0x50] sm:$0xff] }
  0x39   : > { %563 = vmatpush.msrb.mxu3 %v256_v16 }
  0x3a   : > { %763 = vmatmul.msk.f32.gmra.mxu1 %vm275_vm1, %v263_v17 }
  0x40   : > { %755 = vmatmul.msk.f32.gmra.mxu0 %vm275_vm1, %v272_v18 }
  0x42   : > { %764 = vmatmul.msk.f32.gmra.mxu1 %vm275_vm1, %v264_v19 }
  0x48   : > { %756 = vmatmul.msk.f32.gmra.mxu0 %vm275_vm1, %v273_v20 }
  0x4a   : > { %765 = vmatmul.msk.f32.gmra.mxu1 %vm275_vm1, %v265_v21  ;;  %v255_v21 = vld [vmem:[%s1123_s2 + $0x48] sm:$0xff] }
  0x4b   : > { %564 = vmatpush.msrb.mxu3 %v255_v21 }
  0x4d   : > { %565 = vmatpush.msrb.mxu3 %v254_v23 }
  0x95   : > { %v321_v27 = vpop.f32.mrf.mxu0 }
  0x97   : > { %v389_v28 = vpop.f32.mrf.mxu1 }
  0x98   : > { %v390_v29 = vadd.f32 %v389_v28, %v321_v27 }
  0x9a   : > { %v414_v30 = vadd.f32 %v831_v26, %v390_v29  ;;  %v606_v29 = vld [vmem:[#allocation1] sm:$0xff] }
  0x9b   : > { %v342_v52 = vpop.f32.mrf.mxu3  ;;  %607 = vrot.lane.b32.xlu0 %v606_v29, %s902_s28 }
  0x9c   : > { %v422_v31 = vmax.f32 %v414_v30, 0.0 }
  0x9d   : > { %v324_v32 = vpop.f32.mrf.mxu0 }
  0x9e   : > { %767 = vmatmul.msk.f32.vlgmr.msra.gmra.mxu2 %vm431_vm2, %v422_v31 }
  0x9f   : > { %v392_v33 = vpop.f32.mrf.mxu1 }
  0xa0   : > { %v393_v34 = vadd.f32 %v392_v33, %v324_v32 }
  0xa2   : > { %v415_v35 = vadd.f32 %v831_v26, %v393_v34 }
  0xa3   : > { %v410_v61 = vpop.f32.mrf.mxu3 }
  0xa4   : > { %v423_v36 = vmax.f32 %v415_v35, 0.0  ;;  %v411_v0 = vadd.f32 %v410_v61, %v342_v52 }
  0xa5   : > { %v327_v37 = vpop.f32.mrf.mxu0 }
  0xa6   : > { %768 = vmatmul.msk.f32.gmra.mxu2 %vm431_vm2, %v423_v36  ;;  %v421_v1 = vadd.f32 %v831_v26, %v411_v0 }
  0xa7   : > { %v395_v38 = vpop.f32.mrf.mxu1 }
  0xa8   : > { %v396_v39 = vadd.f32 %v395_v38, %v327_v37  ;;  %v429_v2 = vmax.f32 %v421_v1, 0.0 }
  0xaa   : > { %v416_v40 = vadd.f32 %v831_v26, %v396_v39 }
  0xac   : > { %v424_v41 = vmax.f32 %v416_v40, 0.0 }
  0xad   : > { %v330_v42 = vpop.f32.mrf.mxu0 }
  0xae   : > { %769 = vmatmul.msk.f32.gmra.mxu2 %vm431_vm2, %v424_v41 }
  0xaf   : > { %v398_v43 = vpop.f32.mrf.mxu1 }
  0xb0   : > { %v399_v44 = vadd.f32 %v398_v43, %v330_v42 }
  0xb2   : > { %v417_v45 = vadd.f32 %v831_v26, %v399_v44 }
  0xb4   : > { %v425_v46 = vmax.f32 %v417_v45, 0.0 }
  0xb5   : > { %v333_v47 = vpop.f32.mrf.mxu0 }
  0xb6   : > { %770 = vmatmul.msk.f32.gmra.mxu2 %vm431_vm2, %v425_v46 }
  0xb7   : > { %v401_v48 = vpop.f32.mrf.mxu1 }
  0xb8   : > { %v402_v49 = vadd.f32 %v401_v48, %v333_v47 }
  0xba   : > { %v418_v50 = vadd.f32 %v831_v26, %v402_v49 }
  0xbc   : > { %v426_v51 = vmax.f32 %v418_v50, 0.0 }
  0xbd   : > { %v336_v53 = vpop.f32.mrf.mxu0 }
  0xbe   : > { %771 = vmatmul.msk.f32.gmra.mxu2 %vm431_vm2, %v426_v51 }
  0xbf   : > { %v404_v54 = vpop.f32.mrf.mxu1 }
  0xc0   : > { %v405_v55 = vadd.f32 %v404_v54, %v336_v53 }
  0xc2   : > { %v419_v56 = vadd.f32 %v831_v26, %v405_v55 }
  0xc4   : > { %v427_v57 = vmax.f32 %v419_v56, 0.0 }
  0xc5   : > { %v339_v58 = vpop.f32.mrf.mxu0 }
  0xc6   : > { %772 = vmatmul.msk.f32.gmra.mxu2 %vm431_vm2, %v427_v57 }
  0xc7   : > { %v407_v59 = vpop.f32.mrf.mxu1 }
  0xc8   : > { %v408_v60 = vadd.f32 %v407_v59, %v339_v58 }
  0xca   : > { %v420_v62 = vadd.f32 %v831_v26, %v408_v60 }
  0xcc   : > { %v428_v63 = vmax.f32 %v420_v62, 0.0 }
  0xce   : > { %773 = vmatmul.msk.f32.vlgmr.msra.gmra.mxu3 %vm431_vm2, %v428_v63 }
  0xd6   : > { %774 = vmatmul.msk.f32.gmra.mxu3 %vm431_vm2, %v429_v2 }
 0x10d   : > { %v608_v21 = vpop.permute.xlu0 %607 }
 0x121   : > { %v473_v3 = vpop.f32.mrf.mxu2 }
 0x122   : > { %v474_v13 = vadd.f32 %v832_v8, %v473_v3 }
 0x124   : > { %v497_v24 = vsel %vm431_vm2, %v474_v13, 0.0 }
 0x129   : > { %v476_v4 = vpop.f32.mrf.mxu2 }
 0x12a   : > { %v477_v10 = vadd.f32 %v832_v8, %v476_v4  ;;  %v833_v4 = vld [vmem:[%s1123_s2 + $0x60] ss:$0 sm:$0xff] }
 0x12c   : > { %v498_v18 = vsel %vm431_vm2, %v477_v10, 0.0 }
 0x12d   : > { %v499_v27 = vadd.f32 %v498_v18, %v497_v24 }
 0x12f   : > { %v500_v32 = vrot.slane %v499_v27, 4 }
 0x131   : > { %v479_v5 = vpop.f32.mrf.mxu2  ;;  %v501_v36 = vadd.f32 %v500_v32, %v499_v27 }
 0x132   : > { %v480_v11 = vadd.f32 %v832_v8, %v479_v5 }
 0x133   : > { %v502_v40 = vrot.slane %v501_v36, 2 }
 0x134   : > { %v506_v19 = vsel %vm431_vm2, %v480_v11, 0.0 }
 0x135   : > { %v503_v47 = vadd.f32 %v502_v40, %v501_v36 }
 0x137   : > { %v504_v52 = vrot.slane %v503_v47, 1 }
 0x139   : > { %v482_v6 = vpop.f32.mrf.mxu2  ;;  %v505_v57 = vadd.f32 %v504_v52, %v503_v47 }
 0x13a   : > { %v483_v9 = vadd.f32 %v832_v8, %v482_v6 }
 0x13b   : > { %v533_v62 = vmul.f32 0.0625, %v505_v57 }
 0x13c   : > { %v507_v14 = vsel %vm431_vm2, %v483_v9, 0.0 }
 0x13d   : > { %v508_v22 = vadd.f32 %v507_v14, %v506_v19 }
 0x13f   : > { %v509_v30 = vrot.slane %v508_v22, 4 }
 0x141   : > { %v485_v7 = vpop.f32.mrf.mxu2  ;;  %v510_v34 = vadd.f32 %v509_v30, %v508_v22 }
 0x142   : > { %v486_v15 = vadd.f32 %v832_v8, %v485_v7 }
 0x143   : > { %v511_v37 = vrot.slane %v510_v34, 2 }
 0x144   : > { %v515_v25 = vsel %vm431_vm2, %v486_v15, 0.0 }
 0x145   : > { %v512_v43 = vadd.f32 %v511_v37, %v510_v34 }
 0x147   : > { %v513_v49 = vrot.slane %v512_v43, 1 }
 0x149   : > { %v488_v17 = vpop.f32.mrf.mxu2  ;;  %v514_v54 = vadd.f32 %v513_v49, %v512_v43 }
 0x14a   : > { %v489_v20 = vadd.f32 %v832_v8, %v488_v17 }
 0x14b   : > { %v534_v59 = vmul.f32 0.0625, %v514_v54 }
 0x14c   : > { %v516_v26 = vsel %vm431_vm2, %v489_v20, 0.0 }
 0x14d   : > { %v517_v28 = vadd.f32 %v516_v26, %v515_v25  ;;  %v543_v1 = vsel %vm542_vm3, %v534_v59, %v533_v62 }
 0x14f   : > { %v518_v31 = vrot.slane %v517_v28, 4 }
 0x151   : > { %v491_v33 = vpop.f32.mrf.mxu3  ;;  %v519_v35 = vadd.f32 %v518_v31, %v517_v28 }
 0x152   : > { %v492_v39 = vadd.f32 %v832_v8, %v491_v33 }
 0x153   : > { %v520_v38 = vrot.slane %v519_v35, 2 }
 0x154   : > { %v524_v45 = vsel %vm431_vm2, %v492_v39, 0.0 }
 0x155   : > { %v521_v44 = vadd.f32 %v520_v38, %v519_v35 }
 0x157   : > { %v522_v51 = vrot.slane %v521_v44, 1 }
 0x159   : > { %v494_v41 = vpop.f32.mrf.mxu3  ;;  %v523_v56 = vadd.f32 %v522_v51, %v521_v44 }
 0x15a   : > { %v495_v42 = vadd.f32 %v832_v8, %v494_v41 }
 0x15b   : > { %v535_v61 = vmul.f32 0.0625, %v523_v56 }
 0x15c   : > { %v525_v46 = vsel %vm431_vm2, %v495_v42, 0.0 }
 0x15d   : > { %v526_v48 = vadd.f32 %v525_v46, %v524_v45  ;;  %v545_v2 = vsel %vm544_vm4, %v535_v61, %v543_v1 }
 0x15f   : > { %v527_v50 = vrot.slane %v526_v48, 4 }
 0x161   : > { %v528_v53 = vadd.f32 %v527_v50, %v526_v48 }
 0x163   : > { %v529_v55 = vrot.slane %v528_v53, 2 }
 0x165   : > { %v530_v58 = vadd.f32 %v529_v55, %v528_v53 }
 0x167   : > { %v531_v60 = vrot.slane %v530_v58, 1 }
 0x169   : > { %v532_v63 = vadd.f32 %v531_v60, %v530_v58 }
 0x16b   : > { %v536_v0 = vmul.f32 0.0625, %v532_v63 }
 0x16d   : > { %v547_v3 = vsel %vm546_vm5, %v536_v0, %v545_v2 }
 0x16e   : > { %775 = vmatmul.msk.f32.vlgmr.msrb.gmra.mxu3 %vm431_vm2, %v547_v3 }
 0x1f1   : > { %v567_v5 = vpop.f32.mrf.mxu3 }
 0x1f2   : > { %v568_v6 = vadd.f32 %v833_v4, %v567_v5 }
 0x1f4   : > { %v776_v7 = vmul.f32 -1.442695, %v568_v6  ;;  %617 = vrot.lane.b32.xlu1 %v568_v6, %s902_s28 }
 0x1f6   : > { %834 = vpow2.f32 %v776_v7 }
 0x1fc   : > { %v835_v8 = vpop.eup %834 }
 0x1fd   : > { %v573_v9 = vadd.f32 1.0, %v835_v8 }
 0x1ff   : > { %836 = vrcp.f32 %v573_v9  ;;  %v585_v13 = vand.u32 2147483648, %v573_v9  ;;  %v583_v15 = vand.u32 2147483647, %v573_v9  ;;  %vm579_vm7 = vweird.f32 %v573_v9 }
 0x201   : > { %v586_v17 = vor.u32 1.1754944e-38, %v585_v13  ;;  %vm584_vm9 = vcmp.eq.f32.partialorder %v583_v15, 8.507059e+37 }
 0x205   : > { %v837_v10 = vpop.eup %836 }
 0x206   : > { %v575_v11 = vmul.f32 %v837_v10, %v573_v9  ;;  %vm580_vm6 = vweird.f32 %v837_v10 }
 0x207   : > { %vm581_vm8 = vmor %vm579_vm7, %vm580_vm6 }
 0x208   : > { %v576_v12 = vsub.f32 1.0, %v575_v11 }
 0x20a   : > { %v577_v14 = vmul.f32 %v837_v10, %v576_v12 }
 0x20c   : > { %v578_v16 = vadd.f32 %v837_v10, %v577_v14 }
 0x20e   : > { %v582_v18 = vsel %vm581_vm8, %v837_v10, %v578_v16 }
 0x20f   : > { %v587_v19 = vsel %vm584_vm9, %v586_v17, %v582_v18 }
 0x210   : > { %v589_v20 = vmul.f32 0.9, %v587_v19 }
 0x212   : > { %v590_v22 = vadd.f32 0.1, %v589_v20 }
 0x214   : > { %v610_v23 = vmul.f32 %v608_v21, %v590_v22  ;;  %621 = vrot.lane.b32.xlu1 %v590_v22, %s902_s28 }
 0x216   : > { %612 = vrot.lane.b32.xlu0 %v610_v23, %s903_s6 }
 0x266   : > { %v618_v24 = vpop.permute.xlu1 %617 }
 0x286   : > { %v622_v27 = vpop.permute.xlu1 %621 }
 0x288   : > { %v613_v25 = vpop.permute.xlu0 %612 }
 0x289   : > { %v615_v26 = vadd.f32 %v613_v25, %v568_v6 }
 0x28b   : > { %v625_v28 = vsel %vm624_vm10, %v615_v26, %v618_v24 }
 0x28c   : > { %v626_v29 = vsel %vm431_vm2, %v625_v28, %v622_v27 }
 0x28d   : > { %v628_v30 = vrot.slane %v626_v29, 1  ;;  %v629_v31 = vrot.slane %v626_v29, 2  ;;  %v630_v32 = vrot.slane %v626_v29, 3  ;;  %635 = vst.msk [vmem:[%s225_s12] sm:$0x1] %vm634_vm11, %v626_v29 }
 0x28f   : > { %636 = vst.msk [vmem:[%s225_s12 + $0x1] sm:$0x1] %vm634_vm11, %v628_v30 }
 0x290   : > { %637 = vst.msk [vmem:[%s225_s12 + $0x2] sm:$0x1] %vm634_vm11, %v629_v31 }
 0x291   : > { %638 = vst.msk [vmem:[%s225_s12 + $0x3] sm:$0x1] %vm634_vm11, %v630_v32 }
 0x292   : > { %865 = shalt.err (!%p862_p3)
}
 0x293   : > { %s904_s6 = smov 1  }
 0x294   : > { %789 = dma.vmem_to_hbm [thread:$0]  (%p965_p5), %s652_s13, 64, %s654_s14, %s640_s5, %s902_s28, %s902_s28, %s904_s6  }
 0x295 PF: > { %p795_p4 = scmp.ge.s32.totalorder %s900_s18, 2  ;;  %s668_s7 = sand.u32 1, %s888_s15  }
 0x296   : > { %s669_s8 = scalar_lea.sflag [#allocation3], %s668_s7 }
 0x297   : > { %p792_p7 = pnand %p795_p4, %p969_p6 }
 0x299   : > { %p793_p8 = pneg %p792_p7 }
 0x29b   : > { %883 = dma.done.wait (%p793_p8), %s669_s8, 64  }
 0x29c   : > { %885 = vsyncadd (%p793_p8), %s669_s8, 4294967232  ;;  %p14_p9 = scmp.ge.s32.totalorder %s953_s21, 4   ;;  %s1128_s15 = smov %s892_s16 }
 0x29d   : > { %s1129_s16 = smov %s896_s17  ;;  %s1130_s17 = smov %s963_s24 }
 0x29e   : > { %s1131_s18 = smov %s953_s21  ;;  %16 = sbr.rel (!%p14_p9) target bundleno = 3 (0x3), region = 80 }
 0x2a3   :  { %675 = vsyncpa [#allocation3], 1 }
 0x2a4   :  { %677 = vsyncpa [#allocation3 + $0x1], 1 }

</bundles_post_ra>
